<compile_context>
chip_gen: v6e
topology: v6e:2x2x1
jax: 0.10.0
libtpu: 0.0.40
codegen_flags: <defaults>
</compile_context>

<pallas_src>
import functools
import math

import numpy as np
import jax
import jax.numpy as jnp
from jax.experimental import pallas as pl
from jax.experimental.pallas import tpu as pltpu

WINDOW_SIZE = 11
SIGMA = 1.5
PAD = WINDOW_SIZE // 2
C1 = 0.01 ** 2
C2 = 0.03 ** 2


def gaussian_1d(window_size, sigma):
    g = np.array(
        [math.exp(-((x - window_size // 2) ** 2) / (2.0 * sigma ** 2))
         for x in range(window_size)],
        dtype=np.float64,
    )
    g = g / g.sum()
    return g.astype(np.float32)


def gaussian_band_matrix(n, window_size=WINDOW_SIZE, sigma=SIGMA):
    """(n, n) band matrix B with B[i, j] = g[j - i + PAD]; B @ x == zero-padded
    'same' 1-D correlation with the gaussian window.  The gaussian window is
    symmetric, so B is symmetric (usable on either side of a matmul)."""
    g = gaussian_1d(window_size, sigma)
    m = np.zeros((n, n), dtype=np.float32)
    half = window_size // 2
    for i in range(n):
        for t in range(window_size):
            j = i + t - half
            if 0 <= j < n:
                m[i, j] = g[t]
    return m


def _largest_divisor_leq(n, cap):
    cap = max(1, min(n, int(cap)))
    for d in range(cap, 0, -1):
        if n % d == 0:
            return d
    return 1


def _vmem_limit_bytes():
    """Generation-aware VMEM limit (v7x has 64 MiB/TC, v5e/v6e 128 MiB)."""
    cap = 128 * 1024 * 1024
    try:
        cap = int(pltpu.get_tpu_info().vmem_capacity_bytes)
    except Exception:
        pass
    return min((cap * 3) // 4, 64 * 1024 * 1024)


# ----------------------------- Pallas kernels ------------------------------ #

def _minmax_kernel(img1_ref, img2_ref, mn_ref, mx_ref):
    """Per-block min/max over both images (reduced further in plain JAX).
    Outputs are (1, 8, 128) lane-dense tiles holding the broadcast scalar."""
    tb, h, w = img1_ref.shape
    x1 = img1_ref[...].reshape(tb * h, w)
    x2 = img2_ref[...].reshape(tb * h, w)
    mn = jnp.minimum(jnp.min(x1, axis=(0, 1), keepdims=True),
                     jnp.min(x2, axis=(0, 1), keepdims=True))      # (1, 1)
    mx = jnp.maximum(jnp.max(x1, axis=(0, 1), keepdims=True),
                     jnp.max(x2, axis=(0, 1), keepdims=True))      # (1, 1)
    mn_ref[...] = jnp.broadcast_to(mn.reshape(1, 1, 1), (1, 8, 128))
    mx_ref[...] = jnp.broadcast_to(mx.reshape(1, 1, 1), (1, 8, 128))


def _ssim_kernel(TB, H, W,
                 scal_ref, img1_ref, img2_ref, gh_ref, gw_ref,
                 out_ref, feat_ref, yw_ref):
    """Normalize a block of TB (H, W) slices, run the separable gaussian
    filter via banded matmuls (MXU), build the SSIM map slice-by-slice and
    emit the block's partial sum."""
    mn = scal_ref[0]      # global min            (SMEM scalar)
    inv = scal_ref[1]     # 1 / (max - min)       (SMEM scalar)
    n = TB * H

    x1 = (img1_ref[...].reshape(n, W) - mn) * inv
    x2 = (img2_ref[...].reshape(n, W) - mn) * inv

    # Five filter inputs written straight into the VMEM scratch (slice
    # stores; no concatenate materialization).
    fdt = feat_ref.dtype
    feat_ref[0 * n:1 * n, :] = x1.astype(fdt)
    feat_ref[1 * n:2 * n, :] = x2.astype(fdt)
    feat_ref[2 * n:3 * n, :] = (x1 * x1).astype(fdt)
    feat_ref[3 * n:4 * n, :] = (x2 * x2).astype(fdt)
    feat_ref[4 * n:5 * n, :] = (x1 * x2).astype(fdt)

    # W-direction gaussian pass: one MXU matmul over the whole 5-feature stack.
    yw_ref[...] = jnp.dot(feat_ref[...], gw_ref[...],
                          preferred_element_type=jnp.float32).astype(yw_ref.dtype)

    # H-direction pass + SSIM epilogue, one (H, W) slice at a time.  Plain 2-D
    # matmuls: Gh is read once, no (5*TB, H, H) broadcast is materialized and
    # the filtered tensors / ssim_map never exist at full (5*TB*H, W) size.
    gh = gh_ref[...]
    acc = jnp.zeros((1, 1), jnp.float32)
    for b in range(TB):
        base = b * H
        mu1 = jnp.dot(gh, yw_ref[0 * n + base:0 * n + base + H, :],
                      preferred_element_type=jnp.float32)
        mu2 = jnp.dot(gh, yw_ref[1 * n + base:1 * n + base + H, :],
                      preferred_element_type=jnp.float32)
        f11 = jnp.dot(gh, yw_ref[2 * n + base:2 * n + base + H, :],
                      preferred_element_type=jnp.float32)
        f22 = jnp.dot(gh, yw_ref[3 * n + base:3 * n + base + H, :],
                      preferred_element_type=jnp.float32)
        f12 = jnp.dot(gh, yw_ref[4 * n + base:4 * n + base + H, :],
                      preferred_element_type=jnp.float32)

        mu1_sq = mu1 * mu1
        mu2_sq = mu2 * mu2
        mu1_mu2 = mu1 * mu2
        sigma1_sq = f11 - mu1_sq
        sigma2_sq = f22 - mu2_sq
        sigma12 = f12 - mu1_mu2

        num = (2.0 * mu1_mu2 + C1) * (2.0 * sigma12 + C2)
        den = (mu1_sq + mu2_sq + C1) * (sigma1_sq + sigma2_sq + C2)
        # Reciprocal on the EUP keeps the divide off the VALU slots;
        # approx=False preserves full f32 accuracy.
        ssim_map = num * pl.reciprocal(den, approx=False)
        acc = acc + jnp.sum(ssim_map, axis=(0, 1), keepdims=True)

    out_ref[...] = jnp.broadcast_to(acc.reshape(1, 1, 1), (1, 8, 128))


# ------------------------------- wrapper ----------------------------------- #

def ssim_pallas(img1, img2, window_size=WINDOW_SIZE, size_average=True,
                matmul_dtype=jnp.float32):
    N, C, H, W = img1.shape
    NC = N * C

    x1 = img1.reshape(NC, H, W).astype(jnp.float32)
    x2 = img2.reshape(NC, H, W).astype(jnp.float32)

    vmem_limit = _vmem_limit_bytes()
    slice_bytes = H * W * 4
    mm_bytes = np.dtype(matmul_dtype).itemsize

    # keep >= 2 grid steps when possible so both v7x TensorCores get work.
    tc_cap = NC // 2 if NC >= 2 else 1

    # ---- pass-2 working-set estimate (per TB slices) ----------------------
    def est_bytes(tb):
        return (2 * 2 * tb * slice_bytes            # img1/img2 double buffers
                + 2 * 5 * tb * H * W * mm_bytes     # feat + yw scratches
                + 2 * (H * H + W * W) * mm_bytes    # Gh / Gw (double buffered)
                + 24 * H * W * 4)                   # epilogue temporaries

    budget = vmem_limit // 2
    if est_bytes(1) > budget:
        # TODO(synk): banded (11-wide) K-tiling of the gaussian matmuls plus
        # halo row-strip tiling is needed for images this large.
        raise NotImplementedError(
            "image too large for the dense-band SSIM kernel on this TPU "
            "generation; banded/halo tiling not implemented")

    cparams = pltpu.CompilerParams(
        dimension_semantics=("parallel",),
        vmem_limit_bytes=vmem_limit)

    # ---- pass 1: global min / max (HBM-bandwidth bound; big blocks) -------
    tb1 = _largest_divisor_leq(
        NC, min(tc_cap, max(1, (4 * 1024 * 1024) // slice_bytes)))
    g1 = NC // tb1
    img_spec1 = pl.BlockSpec((tb1, H, W), lambda i: (i, 0, 0))
    part_spec1 = pl.BlockSpec((1, 8, 128), lambda i: (i, 0, 0))

    mn_part, mx_part = pl.pallas_call(
        _minmax_kernel,
        out_shape=(jax.ShapeDtypeStruct((g1, 8, 128), jnp.float32),
                   jax.ShapeDtypeStruct((g1, 8, 128), jnp.float32)),
        grid_spec=pltpu.PrefetchScalarGridSpec(
            num_scalar_prefetch=0,
            grid=(g1,),
            in_specs=[img_spec1, img_spec1],
            out_specs=(part_spec1, part_spec1)),
        compiler_params=cparams,
    )(x1, x2)

    mn = jnp.min(mn_part[:, 0, 0])
    mx = jnp.max(mx_part[:, 0, 0])
    # Guard the degenerate constant-image case (mx == mn) against inf/NaN.
    inv = jnp.where(mx > mn, 1.0 / (mx - mn), jnp.float32(0.0))
    scal = jnp.stack([mn, inv]).astype(jnp.float32)   # (2,) SMEM scalars

    # ---- pass 2: normalize + separable gaussian filter (MXU) + SSIM -------
    tb2_cap = min(32, tc_cap)          # cap unroll length of the H-pass loop
    tb2 = 1
    for d in range(min(NC, tb2_cap), 0, -1):
        if NC % d == 0 and est_bytes(d) <= budget:
            tb2 = d
            break
    g2 = NC // tb2

    gh = jnp.asarray(gaussian_band_matrix(H, window_size, SIGMA),
                     dtype=matmul_dtype)
    gw = jnp.asarray(gaussian_band_matrix(W, window_size, SIGMA),
                     dtype=matmul_dtype)

    img_spec2 = pl.BlockSpec((tb2, H, W), lambda i: (i, 0, 0))
    part_spec2 = pl.BlockSpec((1, 8, 128), lambda i: (i, 0, 0))

    kernel = functools.partial(_ssim_kernel, tb2, H, W)
    part_sums = pl.pallas_call(
        kernel,
        out_shape=jax.ShapeDtypeStruct((g2, 8, 128), jnp.float32),
        grid_spec=pltpu.PrefetchScalarGridSpec(
            num_scalar_prefetch=0,
            grid=(g2,),
            in_specs=[pl.BlockSpec(memory_space=pltpu.MemorySpace.SMEM),
                      img_spec2, img_spec2,
                      pl.BlockSpec((H, H), lambda i: (0, 0)),
                      pl.BlockSpec((W, W), lambda i: (0, 0))],
            out_specs=part_spec2,
            scratch_shapes=[pltpu.VMEM((5 * tb2 * H, W), matmul_dtype),
                            pltpu.VMEM((5 * tb2 * H, W), matmul_dtype)]),
        compiler_params=cparams,
    )(scal, x1, x2, gh, gw)

    if size_average:
        return jnp.sum(part_sums[:, 0, 0]) / (N * C * H * W)
    # TODO(synk): size_average=False (per-sample mean over C,H,W) not implemented.
    raise NotImplementedError("size_average=False not supported")


# ---------------------------- pure-JAX reference ---------------------------- #

def ssim_reference(img1, img2, window_size=WINDOW_SIZE):
    g = jnp.asarray(gaussian_1d(window_size, SIGMA))
    w2d = jnp.outer(g, g)
    N, C, H, W = img1.shape
    w = jnp.broadcast_to(w2d[None, None], (C, 1, window_size, window_size))
    mn = jnp.minimum(img1.min(), img2.min())
    mx = jnp.maximum(img1.max(), img2.max())
    x1 = (img1 - mn) / (mx - mn)
    x2 = (img2 - mn) / (mx - mn)
    pad = window_size // 2

    def conv(x):
        return jax.lax.conv_general_dilated(
            x, w, (1, 1), [(pad, pad), (pad, pad)],
            dimension_numbers=("NCHW", "OIHW", "NCHW"),
            feature_group_count=C)

    mu1 = conv(x1)
    mu2 = conv(x2)
    mu1_sq = mu1 ** 2
    mu2_sq = mu2 ** 2
    mu1_mu2 = mu1 * mu2
    sigma1_sq = conv(x1 * x1) - mu1_sq
    sigma2_sq = conv(x2 * x2) - mu2_sq
    sigma12 = conv(x1 * x2) - mu1_mu2
    ssim_map = ((2 * mu1_mu2 + C1) * (2 * sigma12 + C2)) / (
        (mu1_sq + mu2_sq + C1) * (sigma1_sq + sigma2_sq + C2))
    return ssim_map.mean()


if __name__ == "__main__":
    key = jax.random.PRNGKey(0)
    k1, k2 = jax.random.split(key)
    img1 = jax.random.uniform(k1, (2, 4, 16, 16), dtype=jnp.float32)
    img2 = jax.random.uniform(k2, (2, 4, 16, 16), dtype=jnp.float32)

    out = ssim_pallas(img1, img2)
    out = jax.block_until_ready(out)

    ref = ssim_reference(img1, img2)
    np.testing.assert_allclose(np.asarray(out), np.asarray(ref),
                               rtol=1e-4, atol=1e-5)
    print("KERNEL_OK")
</pallas_src>

<mosaic_0001>
module attributes {stable_mosaic.version = 11 : i64} {
  func.func @_minmax_kernel(%arg0: i32, %arg1: memref<4x16x16xf32, #tpu.memory_space<vmem>>, %arg2: memref<4x16x16xf32, #tpu.memory_space<vmem>>, %arg3: memref<1x8x128xf32, #tpu.memory_space<vmem>>, %arg4: memref<1x8x128xf32, #tpu.memory_space<vmem>>) attributes {dimension_semantics = [#tpu.dimension_semantics<parallel>], iteration_bounds = array<i64: 2>, scalar_prefetch = 0 : i64, scratch_operands = 0 : i64, tpu.core_type = #tpu.core_type<tc>, window_params = [{transform_indices = @transform_0, window_bounds = array<i64: 4, 16, 16>}, {transform_indices = @transform_1, window_bounds = array<i64: 4, 16, 16>}, {transform_indices = @transform_2, window_bounds = array<i64: 1, 8, 128>}, {transform_indices = @transform_3, window_bounds = array<i64: 1, 8, 128>}]} {
    %c0 = arith.constant 0 : index
    %c0_0 = arith.constant 0 : index
    %c0_1 = arith.constant 0 : index
    %0 = vector.load %arg1[%c0, %c0_0, %c0_1] : memref<4x16x16xf32, #tpu.memory_space<vmem>>, vector<4x16x16xf32>
    %1 = vector.shape_cast %0 : vector<4x16x16xf32> to vector<64x16xf32>
    %c0_2 = arith.constant 0 : index
    %c0_3 = arith.constant 0 : index
    %c0_4 = arith.constant 0 : index
    %2 = vector.load %arg2[%c0_2, %c0_3, %c0_4] : memref<4x16x16xf32, #tpu.memory_space<vmem>>, vector<4x16x16xf32>
    %3 = vector.shape_cast %2 : vector<4x16x16xf32> to vector<64x16xf32>
    %4 = vector.shape_cast %1 : vector<64x16xf32> to vector<1x64x16xf32>
    %cst = arith.constant dense<0x7F800000> : vector<1xf32>
    %5 = vector.multi_reduction <minimumf>, %4, %cst [1, 2] : vector<1x64x16xf32> to vector<1xf32>
    %6 = vector.shape_cast %5 : vector<1xf32> to vector<1x1x1xf32>
    %7 = vector.extract %6[0, 0, 0] : f32 from vector<1x1x1xf32>
    %8 = vector.broadcast %7 : f32 to vector<1x1xf32>
    %9 = vector.shape_cast %3 : vector<64x16xf32> to vector<1x64x16xf32>
    %cst_5 = arith.constant dense<0x7F800000> : vector<1xf32>
    %10 = vector.multi_reduction <minimumf>, %9, %cst_5 [1, 2] : vector<1x64x16xf32> to vector<1xf32>
    %11 = vector.shape_cast %10 : vector<1xf32> to vector<1x1x1xf32>
    %12 = vector.extract %11[0, 0, 0] : f32 from vector<1x1x1xf32>
    %13 = vector.broadcast %12 : f32 to vector<1x1xf32>
    %14 = arith.minimumf %8, %13 : vector<1x1xf32>
    %15 = vector.shape_cast %1 : vector<64x16xf32> to vector<1x64x16xf32>
    %cst_6 = arith.constant dense<0xFF800000> : vector<1xf32>
    %16 = vector.multi_reduction <maximumf>, %15, %cst_6 [1, 2] : vector<1x64x16xf32> to vector<1xf32>
    %17 = vector.shape_cast %16 : vector<1xf32> to vector<1x1x1xf32>
    %18 = vector.extract %17[0, 0, 0] : f32 from vector<1x1x1xf32>
    %19 = vector.broadcast %18 : f32 to vector<1x1xf32>
    %20 = vector.shape_cast %3 : vector<64x16xf32> to vector<1x64x16xf32>
    %cst_7 = arith.constant dense<0xFF800000> : vector<1xf32>
    %21 = vector.multi_reduction <maximumf>, %20, %cst_7 [1, 2] : vector<1x64x16xf32> to vector<1xf32>
    %22 = vector.shape_cast %21 : vector<1xf32> to vector<1x1x1xf32>
    %23 = vector.extract %22[0, 0, 0] : f32 from vector<1x1x1xf32>
    %24 = vector.broadcast %23 : f32 to vector<1x1xf32>
    %25 = arith.maximumf %19, %24 : vector<1x1xf32>
    %26 = vector.shape_cast %14 : vector<1x1xf32> to vector<1x1x1xf32>
    %27 = vector.shape_cast %26 : vector<1x1x1xf32> to vector<1x1x1xf32>
    %28 = vector.broadcast %27 : vector<1x1x1xf32> to vector<1x8x128xf32>
    %c0_8 = arith.constant 0 : index
    %c0_9 = arith.constant 0 : index
    %c0_10 = arith.constant 0 : index
    %29 = vector.load %arg3[%c0_8, %c0_9, %c0_10] : memref<1x8x128xf32, #tpu.memory_space<vmem>>, vector<1x8x128xf32>
    tpu.vector_store %arg3[%c0_8, %c0_9, %c0_10], %28 {strides = array<i32>} : memref<1x8x128xf32, #tpu.memory_space<vmem>>, vector<1x8x128xf32>,
    %30 = vector.shape_cast %25 : vector<1x1xf32> to vector<1x1x1xf32>
    %31 = vector.shape_cast %30 : vector<1x1x1xf32> to vector<1x1x1xf32>
    %32 = vector.broadcast %31 : vector<1x1x1xf32> to vector<1x8x128xf32>
    %c0_11 = arith.constant 0 : index
    %c0_12 = arith.constant 0 : index
    %c0_13 = arith.constant 0 : index
    %33 = vector.load %arg4[%c0_11, %c0_12, %c0_13] : memref<1x8x128xf32, #tpu.memory_space<vmem>>, vector<1x8x128xf32>
    tpu.vector_store %arg4[%c0_11, %c0_12, %c0_13], %32 {strides = array<i32>} : memref<1x8x128xf32, #tpu.memory_space<vmem>>, vector<1x8x128xf32>,
    return
  }
  func.func @transform_0(%arg0: i32) -> (i32, i32, i32) {
    %c0_i32 = arith.constant 0 : i32
    %c0_i32_0 = arith.constant 0 : i32
    %c0_i32_1 = arith.constant 0 : i32
    return %arg0, %c0_i32, %c0_i32_0 : i32, i32, i32
  }
  func.func @transform_1(%arg0: i32) -> (i32, i32, i32) {
    %c0_i32 = arith.constant 0 : i32
    %c0_i32_0 = arith.constant 0 : i32
    %c0_i32_1 = arith.constant 0 : i32
    return %arg0, %c0_i32, %c0_i32_0 : i32, i32, i32
  }
  func.func @transform_2(%arg0: i32) -> (i32, i32, i32) {
    %c0_i32 = arith.constant 0 : i32
    %c0_i32_0 = arith.constant 0 : i32
    %c0_i32_1 = arith.constant 0 : i32
    return %arg0, %c0_i32, %c0_i32_0 : i32, i32, i32
  }
  func.func @transform_3(%arg0: i32) -> (i32, i32, i32) {
    %c0_i32 = arith.constant 0 : i32
    %c0_i32_0 = arith.constant 0 : i32
    %c0_i32_1 = arith.constant 0 : i32
    return %arg0, %c0_i32, %c0_i32_0 : i32, i32, i32
  }
}

</mosaic_0001>

<bundles_post_ra>
// kernel: tpu_custom_call.1
= control target key start
LH: loop header
LB: loop body
LE: loop exit
PB: predicated region body
PF: predicated region fallthrough
CT: control target
= control target key end

     0   :  { %9 = vsyncpa [#allocation3], 0  ;;  %s1087_s0 = inlined_call_operand.hbm [shape: f32[8,16,16], index: 0, kind: input, shape index: {}]   ;;  %s1088_s1 = inlined_call_operand.hbm [shape: f32[8,16,16], index: 1, kind: input, shape index: {}]   ;;  %s1089_s2 = inlined_call_operand.hbm [shape: f32[2,8,128], index: 2, kind: output, shape index: {0}]   ;;  %s1090_s3 = inlined_call_operand.hbm [shape: f32[2,8,128], index: 3, kind: output, shape index: {1}]  }
   0x1   :  { %11 = vsyncpa [#allocation3 + $0x1], 0 }
   0x2   :  { %12 = vsyncpa [#allocation6], 0 }
   0x3   :  { %14 = vsyncpa [#allocation6 + $0x1], 0 }
   0x4   :  { %15 = vsyncpa [#allocation4], 0 }
   0x5   :  { %17 = vsyncpa [#allocation4 + $0x1], 0 }
   0x6   :  { %18 = vsyncpa [#allocation9], 0 }
   0x7   :  { %20 = vsyncpa [#allocation9 + $0x1], 0  ;;  %s796_s12 = smov 0   ;;  %s798_s13 = smov 0  }
   0x8   :  { %s800_s14 = smov 0   ;;  %s802_s15 = smov 0  }
   0x9 LB: > { %s817_s16 = sadd.s32 4294967295, %s768_s15   ;;  %s522_s17 = sadd.s32 4294967294, %s768_s15   ;;  %s768_s15 = sphi %s802_s15, %s1106_s15   ;;  %s764_s14 = sphi %s800_s14, %s1105_s14   ;;  %s760_s13 = sphi %s798_s13, %s1104_s13   ;;  %s756_s12 = sphi %s796_s12, %s1103_s12  }
   0xa   : > { %s821_s18 = sadd.s32 1, %s768_s15   ;;  %s33_s19 = sadd.s32 1, %s764_s14 }
   0xb   : > { %s30_s20 = ssub.s32 %s768_s15, %s821_s18  ;;  %p40_p0 = scmp.ne.s32.totalorder %s764_s14, %s760_s13 }
   0xc   : > { %p31_p1 = scmp.eq.s32.totalorder %s30_s20, 0  ;;  %p41_p2 = scmp.eq.s32.totalorder %s768_s15, 0 }
   0xd   : > { %p46_p3 = scmp.ne.s32.totalorder %s760_s13, %s756_s12  ;;  %p47_p4 = scmp.eq.s32.totalorder %s817_s16, 0 }
   0xe   : > { %s833_s21 = scalar_select %p31_p1, %s764_s14, %s33_s19  }
   0xf   : > { %p835_p5 = por %p41_p2, %p40_p0  ;;  %p839_p6 = por %p47_p4, %p46_p3 }
  0x10   : > { %p96_p7 = scmp.eq.s32.totalorder %s817_s16, 1  ;;  %p102_p8 = scmp.eq.s32.totalorder %s522_s17, 1 }
  0x11   : > { %s1094_s23 = scalar_select %p839_p6, 1, 0 }
  0x12   : > { %p578_p10 = scmp.lt.s32.totalorder %s768_s15, 2  ;;  %p846_p11 = por %p96_p7, %p40_p0 }
  0x13   : > { %p850_p12 = por %p102_p8, %p46_p3  ;;  %s855_s26 = sand.u32 1, %s764_s14  }
  0x14   : > { %s1095_s24 = scalar_select %p846_p11, 1, 0 }
  0x15   : > { %s1096_s25 = scalar_select %p850_p12, 1, 0 }
  0x16   : > { %s545_s27 = sshll.u32 %s768_s15, 10  ;;  %s525_s28 = sshll.u32 %s855_s26, 6 }
  0x17   : > { %s864_s4 = scalar_lea.hbm %s1087_s0, %s545_s27  ;;  %s152_s5 = scalar_lea.vmem [#allocation2], %s525_s28 }
  0x18   : > { %s160_s6 = sshll.u32 %s152_s5, 4  ;;  %p870_p13 = pnand %p578_p10, %p835_p5  ;;  %s874_s6 = int_to_ptr.vmem [resolvable:$true] %s160_s6 }
  0x19   : > { %s149_s8 = scalar_lea.sflag [#allocation3], %s855_s26  ;;  %s614_s9 = scalar_lea.hbm %s864_s4, 1024 }
  0x1a   : > { %p615_p0 = scmp.ne.s32.totalorder %s864_s4, %s614_s9  ;;  %p616_p1 = pneg %p870_p13 }
  0x1b   : > { %s619_s17 = scalar_lea.hbm %s1087_s0, 2048  ;;  %p620_p4 = scmp.lt.s32.totalorder %s864_s4, %s1087_s0 }
  0x1c   : > { %p617_p2 = pnand %p616_p1, %p615_p0  ;;  %p621_p5 = scmp.lt.s32.totalorder %s619_s17, %s614_s9 }
  0x1e   : > { %p618_p3 = pneg %p617_p2  ;;  %p622_p7 = por %p621_p5, %p620_p4 }
  0x20   : > { %p623_p8 = pnand %p622_p7, %p618_p3 }
  0x22   : > { %626 = shalt.err (!%p623_p8)
}
  0x23   : > { %s627_s22 = scalar_lea.vmem %s874_s6, 1024  ;;  %s770_s29 = smov [#allocation2]  }
  0x24   : > { %p628_p10 = scmp.ne.s32.totalorder %s874_s6, %s627_s22  ;;  %s632_s30 = sshll.u32 %s770_s29, 4  ;;  %s633_s30 = int_to_ptr.vmem [resolvable:$false] %s632_s30 }
  0x25   : > { %s634_s5 = scalar_lea.vmem %s633_s30, 2048  ;;  %p635_p9 = scmp.lt.s32.totalorder %s874_s6, %s633_s30 }
  0x26   : > { %p630_p0 = pnand %p628_p10, %p616_p1  ;;  %p636_p12 = scmp.lt.s32.totalorder %s634_s5, %s627_s22 }
  0x28   : > { %p631_p2 = pneg %p630_p0  ;;  %p637_p11 = por %p636_p12, %p635_p9 }
  0x2a   : > { %p638_p4 = pnand %p637_p11, %p631_p2 }
  0x2c   : > { %641 = shalt.err (!%p638_p4)
}
  0x2d   : > { %s771_s9 = smov 128   ;;  %s772_s10 = smov 8  }
  0x2e   : > { %567 = dma.hbm_to_vmem [thread:$0]  (!%p870_p13), %s864_s4, 1024, %s874_s6, %s149_s8, %s771_s9, %s771_s9, %s772_s10  }
  0x2f   : > { %p533_p9 = scmp.ge.s32.totalorder %s768_s15, 1  ;;  %p190_p11 = scmp.lt.s32.totalorder %s768_s15, 3 }
  0x30   : > { %s917_s20 = scalar_lea.hbm %s1088_s1, %s545_s27  ;;  %s174_s22 = scalar_lea.vmem [#allocation5], %s525_s28 }
  0x31   : > { %p908_p12 = pnand %p533_p9, %p190_p11  ;;  %s182_s29 = sshll.u32 %s174_s22, 4  ;;  %s921_s29 = int_to_ptr.vmem [resolvable:$true] %s182_s29 }
  0x32   : > { %s171_s4 = scalar_lea.sflag [#allocation6], %s855_s26  ;;  %s642_s6 = scalar_lea.hbm %s917_s20, 1024 }
  0x33   : > { %p643_p3 = scmp.ne.s32.totalorder %s917_s20, %s642_s6  ;;  %s647_s27 = scalar_lea.hbm %s1088_s1, 2048 }
  0x34   : > { %p648_p8 = scmp.lt.s32.totalorder %s917_s20, %s1088_s1  ;;  %p649_p10 = scmp.lt.s32.totalorder %s647_s27, %s642_s6 }
  0x35   : > { %p645_p5 = pnand %p643_p3, %p616_p1 }
  0x36   : > { %p650_p0 = por %p649_p10, %p648_p8 }
  0x37   : > { %p646_p7 = pneg %p645_p5 }
  0x39   : > { %p651_p2 = pnand %p650_p0, %p646_p7 }
  0x3b   : > { %654 = shalt.err (!%p651_p2)
}
  0x3c   : > { %s655_s26 = scalar_lea.vmem %s921_s29, 1024  ;;  %s773_s28 = smov [#allocation5]  }
  0x3d   : > { %p656_p4 = scmp.ne.s32.totalorder %s921_s29, %s655_s26  ;;  %s660_s19 = sshll.u32 %s773_s28, 4  ;;  %s661_s19 = int_to_ptr.vmem [resolvable:$false] %s660_s19 }
  0x3e   : > { %s662_s22 = scalar_lea.vmem %s661_s19, 2048  ;;  %p663_p3 = scmp.lt.s32.totalorder %s921_s29, %s661_s19 }
  0x3f   : > { %p658_p9 = pnand %p656_p4, %p616_p1  ;;  %p664_p5 = scmp.lt.s32.totalorder %s662_s22, %s655_s26 }
  0x41   : > { %p659_p11 = pneg %p658_p9  ;;  %p665_p6 = por %p664_p5, %p663_p3 }
  0x43   : > { %p666_p8 = pnand %p665_p6, %p659_p11 }
  0x45   : > { %669 = shalt.err (!%p666_p8)
}
  0x46   : > { %570 = dma.hbm_to_vmem [thread:$0]  (!%p870_p13), %s917_s20, 1024, %s921_s29, %s171_s4, %s771_s9, %s771_s9, %s772_s10  }
  0x47   : > { %194 = sbr.rel (%p908_p12) target bundleno = 341 (0x155), region = 28  ;;  %s952_s6 = sand.u32 (!%p908_p12), 1, %s760_s13  }
  0x48   : > { %s534_s8 = sshll.u32 (!%p908_p12), %s952_s6, 6  ;;  %s197_s30 = scalar_lea.sflag (!%p908_p12), [#allocation3], %s952_s6 }
  0x49   : > { %s200_s27 = scalar_lea.vmem (!%p908_p12), [#allocation2], %s534_s8  ;;  %p1099_p6 = scmp.ne.s32.totalorder (!%p908_p12), %s1094_s23, 0 }
  0x4c   : > { %739 = dma.done.wait (%p1099_p6), %s197_s30, 1024  }
  0x4d   : > { %741 = vsyncadd (%p1099_p6), %s197_s30, 4294966272  ;;  %s206_s7 = scalar_lea.sflag [#allocation6], %s952_s6  ;;  %s961_s9 = scalar_lea.vmem [#allocation5], %s534_s8 }
  0x4e   : > { %743 = dma.done.wait (%p1099_p6), %s206_s7, 1024  }
  0x4f   : > { %745 = vsyncadd (%p1099_p6), %s206_s7, 4294966272  ;;  %vm260_vm0 = vcmask 130048   ;;  %v244_v0 = vld [vmem:[%s200_s27] sm:$0xff]  ;;  %v245_v1 = vld [vmem:[%s200_s27 + $0x8] sm:$0xff]  ;;  %s536_s23 = sshll.u32 %s952_s6, 3  ;;  %s540_s10 = sshll.u32 %s817_s16, 7 }
  0x50   : > { %v246_v2 = vld [vmem:[%s200_s27 + $0x10] sm:$0xff]  ;;  %v247_v3 = vld [vmem:[%s200_s27 + $0x18] sm:$0xff]  ;;  %v248_v4 = vld [vmem:[%s200_s27 + $0x20] sm:$0xff]  ;;  %v312_v6 = vsel %vm260_vm0, %v244_v0, -inf  ;;  %v313_v7 = vsel %vm260_vm0, %v245_v1, -inf  ;;  %v261_v14 = vsel %vm260_vm0, %v244_v0, inf  ;;  %s1012_s26 = scalar_lea.hbm %s1089_s2, %s540_s10 }
  0x51   : > { %v249_v5 = vld [vmem:[%s200_s27 + $0x28] sm:$0xff]  ;;  %v314_v8 = vsel %vm260_vm0, %v246_v2, -inf  ;;  %v250_v9 = vld [vmem:[%s200_s27 + $0x30] sm:$0xff]  ;;  %v251_v10 = vld [vmem:[%s200_s27 + $0x38] sm:$0xff]  ;;  %v315_v11 = vsel %vm260_vm0, %v247_v3, -inf  ;;  %v316_v12 = vsel %vm260_vm0, %v248_v4, -inf  ;;  %s1022_s27 = scalar_lea.hbm %s1090_s3, %s540_s10 }
  0x52   : > { %v318_v13 = vsel %vm260_vm0, %v249_v5, -inf  ;;  %v317_v15 = vmax.f32 %v312_v6, %v316_v12  ;;  %v320_v17 = vsel %vm260_vm0, %v250_v9, -inf  ;;  %v322_v18 = vsel %vm260_vm0, %v251_v10, -inf  ;;  %v252_v23 = vld [vmem:[%s961_s9] sm:$0xff]  ;;  %v253_v24 = vld [vmem:[%s961_s9 + $0x8] sm:$0xff]  ;;  %v254_v29 = vld [vmem:[%s961_s9 + $0x10] sm:$0xff] }
  0x53   : > { %v319_v16 = vmax.f32 %v313_v7, %v318_v13  ;;  %v321_v19 = vmax.f32 %v314_v8, %v320_v17  ;;  %v323_v20 = vmax.f32 %v315_v11, %v322_v18  ;;  %v262_v21 = vsel %vm260_vm0, %v245_v1, inf  ;;  %v255_v30 = vld [vmem:[%s961_s9 + $0x18] sm:$0xff]  ;;  %v256_v35 = vld [vmem:[%s961_s9 + $0x20] sm:$0xff]  ;;  %v257_v36 = vld [vmem:[%s961_s9 + $0x28] sm:$0xff]  ;;  %s234_s20 = scalar_lea.vmem [#allocation7], %s536_s23  ;;  %s1014_s19 = scalar_lea.vmem [#allocation8], %s536_s23 }
  0x54   : > { %v263_v22 = vsel %vm260_vm0, %v246_v2, inf  ;;  %v264_v26 = vsel %vm260_vm0, %v247_v3, inf  ;;  %v265_v27 = vsel %vm260_vm0, %v248_v4, inf  ;;  %v267_v28 = vsel %vm260_vm0, %v249_v5, inf  ;;  %v258_v37 = vld [vmem:[%s961_s9 + $0x30] sm:$0xff]  ;;  %v259_v45 = vld [vmem:[%s961_s9 + $0x38] sm:$0xff] }
  0x55   : > { %v324_v25 = vmax.f32 %v317_v15, %v319_v16  ;;  %v325_v31 = vmax.f32 %v321_v19, %v323_v20  ;;  %v266_v32 = vmin.f32 %v261_v14, %v265_v27  ;;  %v268_v33 = vmin.f32 %v262_v21, %v267_v28  ;;  %s384_s29 = sshll.u32 %s234_s20, 4  ;;  %s397_s22 = sshll.u32 %s1014_s19, 4  ;;  %s1017_s29 = int_to_ptr.vmem [resolvable:$true] %s384_s29  ;;  %s1024_s22 = int_to_ptr.vmem [resolvable:$true] %s397_s22 }
  0x56   : > { %v269_v34 = vsel %vm260_vm0, %v250_v9, inf  ;;  %v271_v39 = vsel %vm260_vm0, %v251_v10, inf  ;;  %v337_v40 = vsel %vm260_vm0, %v252_v23, -inf  ;;  %v338_v41 = vsel %vm260_vm0, %v253_v24, -inf  ;;  %s366_s7 = scalar_lea.sflag [#allocation4], %s952_s6  ;;  %s670_s9 = scalar_lea.vmem %s1017_s29, 128 }
  0x57   : > { %v270_v38 = vmin.f32 %v263_v22, %v269_v34  ;;  %v326_v42 = vmax.f32 %v324_v25, %v325_v31  ;;  %v272_v43 = vmin.f32 %v264_v26, %v271_v39  ;;  %v273_v44 = vmin.f32 %v266_v32, %v268_v33  ;;  %p671_p13 = scmp.ne.s32.totalorder %s1017_s29, %s670_s9  ;;  %p1100_p1 = scmp.ne.s32.totalorder %s1095_s24, 0 }
  0x58   : > { %v339_v46 = vsel %vm260_vm0, %v254_v29, -inf  ;;  %v340_v47 = vsel %vm260_vm0, %v255_v30, -inf  ;;  %v341_v48 = vsel %vm260_vm0, %v256_v35, -inf  ;;  %v343_v49 = vsel %vm260_vm0, %v257_v36, -inf  ;;  %s774_s23 = smov [#allocation7]  }
  0x59   : > { %v345_v50 = vsel %vm260_vm0, %v258_v37, -inf  ;;  %327 = vmax.xlane.f32.xlu1 %v326_v42  ;;  %v274_v51 = vmin.f32 %v270_v38, %v272_v43  ;;  %v342_v52 = vmax.f32 %v337_v40, %v341_v48  ;;  %v344_v53 = vmax.f32 %v338_v41, %v343_v49  ;;  %p672_p12 = pnand %p671_p13, %p1100_p1 }
  0x5a   : > { %v346_v54 = vmax.f32 %v339_v46, %v345_v50  ;;  %v347_v55 = vsel %vm260_vm0, %v259_v45, -inf  ;;  %v286_v56 = vsel %vm260_vm0, %v252_v23, inf  ;;  %v287_v57 = vsel %vm260_vm0, %v253_v24, inf }
  0x5b   : > { %v288_v58 = vsel %vm260_vm0, %v254_v29, inf  ;;  %v275_v59 = vmin.f32 %v273_v44, %v274_v51  ;;  %v348_v60 = vmax.f32 %v340_v47, %v347_v55  ;;  %v349_v61 = vmax.f32 %v342_v52, %v344_v53  ;;  %p673_p7 = pneg %p672_p12 }
  0x5c   : > { %v289_v62 = vsel %vm260_vm0, %v255_v30, inf  ;;  %v290_v63 = vsel %vm260_vm0, %v256_v35, inf  ;;  %v292_v0 = vsel %vm260_vm0, %v257_v36, inf  ;;  %v294_v1 = vsel %vm260_vm0, %v258_v37, inf }
  0x5d   : > { %v296_v2 = vsel %vm260_vm0, %v259_v45, inf  ;;  %276 = vmin.xlane.f32.xlu0 %v275_v59  ;;  %v350_v3 = vmax.f32 %v346_v54, %v348_v60  ;;  %v291_v4 = vmin.f32 %v286_v56, %v290_v63  ;;  %v293_v5 = vmin.f32 %v287_v57, %v292_v0 }
  0x5e   : > { %v295_v6 = vmin.f32 %v288_v58, %v294_v1  ;;  %v297_v7 = vmin.f32 %v289_v62, %v296_v2 }
  0x5f   : > { %v351_v8 = vmax.f32 %v349_v61, %v350_v3  ;;  %v298_v9 = vmin.f32 %v291_v4, %v293_v5 }
  0x60   : > { %v299_v10 = vmin.f32 %v295_v6, %v297_v7 }
  0x61   : > { %352 = vmax.xlane.f32.xlu1 %v351_v8 }
  0x62   : > { %v300_v11 = vmin.f32 %v298_v9, %v299_v10 }
  0x64   : > { %301 = vmin.xlane.f32.xlu0 %v300_v11 }
  0xe2   : > { %v328_v12 = vpop.xlane.xlu1 %327 }
  0xe3   : > { %v329_v13 = vrot.slane %v328_v12, 4 }
  0xe5   : > { %v330_v16 = vmax.f32 %v328_v12, %v329_v13 }
  0xe6   : > { %v277_v14 = vpop.xlane.xlu0 %276 }
  0xe7   : > { %v278_v15 = vrot.slane %v277_v14, 4  ;;  %v331_v21 = vrot.slane %v330_v16, 2 }
  0xe9   : > { %v279_v17 = vmin.f32 %v277_v14, %v278_v15  ;;  %v332_v31 = vmax.f32 %v330_v16, %v331_v21 }
  0xea   : > { %v353_v18 = vpop.xlane.xlu1 %352 }
  0xeb   : > { %v280_v19 = vrot.slane %v279_v17, 2  ;;  %v354_v20 = vrot.slane %v353_v18, 4  ;;  %v333_v35 = vrot.slane %v332_v31, 1 }
  0xed   : > { %v355_v22 = vmax.f32 %v353_v18, %v354_v20  ;;  %v302_v23 = vpop.xlane.xlu0 %301  ;;  %v281_v24 = vmin.f32 %v279_v17, %v280_v19  ;;  %v334_v39 = vmax.f32 %v332_v31, %v333_v35 }
  0xee   : > { %v303_v25 = vrot.slane %v302_v23, 4 }
  0xef   : > { %v356_v26 = vrot.slane %v355_v22, 2  ;;  %v282_v27 = vrot.slane %v281_v24, 1 }
  0xf0   : > { %v304_v28 = vmin.f32 %v302_v23, %v303_v25 }
  0xf1   : > { %v357_v29 = vmax.f32 %v355_v22, %v356_v26  ;;  %v283_v30 = vmin.f32 %v281_v24, %v282_v27 }
  0xf2   : > { %v305_v32 = vrot.slane %v304_v28, 2 }
  0xf3   : > { %548 = vpush %v283_v30  ;;  %v358_v34 = vrot.slane %v357_v29, 1 }
  0xf4   : > { %v306_v33 = vmin.f32 %v304_v28, %v305_v32 }
  0xf5   : > { %v359_v38 = vmax.f32 %v357_v29, %v358_v34 }
  0xf6   : > { %v307_v36 = vrot.slane %v306_v33, 1 }
  0xf8   : > { %v308_v37 = vmin.f32 %v306_v33, %v307_v36 }
  0xfa   : > { %550 = vpush %v308_v37 }
  0xfb   : > { %552 = vpush %v334_v39 }
  0xfc   : > { %554 = vpush %v359_v38 }
 0x124   : > { %s549_s11 = spop %548 }
 0x125   : > { %v285_v40 = vstv %s549_s11  ;;  %s674_s11 = sshll.u32 %s774_s23, 4  ;;  %s675_s11 = int_to_ptr.vmem [resolvable:$false] %s674_s11 }
 0x126   : > { %p677_p10 = scmp.lt.s32.totalorder %s1017_s29, %s675_s11 }
 0x12b   : > { %s551_s4 = spop %550 }
 0x12c   : > { %v310_v41 = vstv %s551_s4  ;;  %s553_s28 = spop %552  ;;  %s676_s4 = scalar_lea.vmem %s675_s11, 256 }
 0x12d   : > { %v311_v42 = vmin.f32 %v285_v40, %v310_v41  ;;  %v336_v43 = vstv %s553_s28  ;;  %s555_s16 = spop %554  ;;  %p678_p0 = scmp.lt.s32.totalorder %s676_s4, %s670_s9 }
 0x12e   : > { %v361_v44 = vstv %s555_s16 }
 0x12f   : > { %v362_v45 = vmax.f32 %v336_v43, %v361_v44  ;;  %363 = vst [vmem:[%s234_s20] sm:$0xff] %v311_v42  ;;  %p679_p2 = por %p678_p0, %p677_p10 }
 0x131   : > { %p680_p4 = pnand %p679_p2, %p673_p7 }
 0x133   : > { %683 = shalt.err (!%p680_p4)
}
 0x134   : > { %s684_s10 = scalar_lea.hbm %s1012_s26, 128  ;;  %s688_s17 = scalar_lea.hbm %s1089_s2, 256 }
 0x135   : > { %p685_p9 = scmp.ne.s32.totalorder %s1012_s26, %s684_s10  ;;  %p689_p5 = scmp.lt.s32.totalorder %s1012_s26, %s1089_s2 }
 0x136   : > { %p690_p8 = scmp.lt.s32.totalorder %s688_s17, %s684_s10 }
 0x137   : > { %p686_p11 = pnand %p685_p9, %p1100_p1 }
 0x138   : > { %p691_p6 = por %p690_p8, %p689_p5 }
 0x139   : > { %p687_p3 = pneg %p686_p11 }
 0x13b   : > { %p692_p13 = pnand %p691_p6, %p687_p3 }
 0x13d   : > { %695 = shalt.err (!%p692_p13)
}
 0x13e   : > { %560 = dma.vmem_to_hbm [thread:$0]  (%p1100_p1), %s1017_s29, 128, %s1012_s26, %s366_s7   ;;  %364 = vst [vmem:[%s1014_s19] sm:$0xff] %v362_v45 }
 0x13f   : > { %s371_s8 = scalar_lea.sflag [#allocation9], %s952_s6  ;;  %s696_s30 = scalar_lea.vmem %s1024_s22, 128 }
 0x140   : > { %p697_p12 = scmp.ne.s32.totalorder %s1024_s22, %s696_s30  ;;  %s775_s9 = smov [#allocation8]  }
 0x141   : > { %s700_s23 = sshll.u32 %s775_s9, 4  ;;  %s701_s23 = int_to_ptr.vmem [resolvable:$false] %s700_s23 }
 0x142   : > { %p698_p7 = pnand %p697_p12, %p1100_p1  ;;  %s702_s11 = scalar_lea.vmem %s701_s23, 256 }
 0x143   : > { %p703_p0 = scmp.lt.s32.totalorder %s1024_s22, %s701_s23  ;;  %p704_p2 = scmp.lt.s32.totalorder %s702_s11, %s696_s30 }
 0x144   : > { %p699_p10 = pneg %p698_p7 }
 0x145   : > { %p705_p4 = por %p704_p2, %p703_p0 }
 0x147   : > { %p706_p9 = pnand %p705_p4, %p699_p10 }
 0x149   : > { %709 = shalt.err (!%p706_p9)
}
 0x14a   : > { %s710_s29 = scalar_lea.hbm %s1022_s27, 128  ;;  %s714_s19 = scalar_lea.hbm %s1090_s3, 256 }
 0x14b   : > { %p711_p11 = scmp.ne.s32.totalorder %s1022_s27, %s710_s29  ;;  %p715_p8 = scmp.lt.s32.totalorder %s1022_s27, %s1090_s3 }
 0x14c   : > { %p716_p6 = scmp.lt.s32.totalorder %s714_s19, %s710_s29 }
 0x14d   : > { %p712_p3 = pnand %p711_p11, %p1100_p1 }
 0x14e   : > { %p717_p13 = por %p716_p6, %p715_p8 }
 0x14f   : > { %p713_p5 = pneg %p712_p3 }
 0x151   : > { %p718_p12 = pnand %p717_p13, %p713_p5 }
 0x153   : > { %721 = shalt.err (!%p718_p12)
}
 0x154   : > { %561 = dma.vmem_to_hbm [thread:$0]  (%p1100_p1), %s1024_s22, 128, %s1022_s27, %s371_s8  }
 0x155 PF: > { %s409_s10 = sand.u32 1, %s756_s12   ;;  %p1101_p7 = scmp.ne.s32.totalorder %s1096_s25, 0 }
 0x156   : > { %p1102_p10 = scmp.ge.s32.totalorder %s768_s15, 2  ;;  %s410_s20 = scalar_lea.sflag [#allocation4], %s409_s10 }
 0x158   : > { %p572_p0 = pnand %p1102_p10, %p1101_p7 }
 0x15a   : > { %p573_p2 = pneg %p572_p0 }
 0x15c   : > { %747 = dma.done.wait (%p573_p2), %s410_s20, 128  }
 0x15d   : > { %749 = vsyncadd (%p573_p2), %s410_s20, 4294967168  ;;  %s419_s5 = scalar_lea.sflag [#allocation9], %s409_s10 }
 0x15e   : > { %751 = dma.done.wait (%p573_p2), %s419_s5, 128  }
 0x15f   : > { %753 = vsyncadd (%p573_p2), %s419_s5, 4294967168  ;;  %p23_p1 = scmp.ge.s32.totalorder %s821_s18, 4   ;;  %s1103_s12 = smov %s760_s13 }
 0x160   : > { %s1104_s13 = smov %s764_s14  ;;  %s1105_s14 = smov %s833_s21 }
 0x161   : > { %s1106_s15 = smov %s821_s18  ;;  %25 = sbr.rel (!%p23_p1) target bundleno = 9 (0x9), region = 103 }
 0x166   :  { %424 = vsyncpa [#allocation3], 1 }
 0x167   :  { %426 = vsyncpa [#allocation3 + $0x1], 1 }
 0x168   :  { %427 = vsyncpa [#allocation6], 1 }
 0x169   :  { %429 = vsyncpa [#allocation6 + $0x1], 1 }
 0x16a   :  { %430 = vsyncpa [#allocation4], 1 }
 0x16b   :  { %432 = vsyncpa [#allocation4 + $0x1], 1 }
 0x16c   :  { %433 = vsyncpa [#allocation9], 1 }
 0x16d   :  { %435 = vsyncpa [#allocation9 + $0x1], 1 }

</bundles_post_ra>
